<compile_context>
chip_gen: v5e
topology: v5e:2x2
jax: 0.10.0
libtpu: 0.0.40
codegen_flags: <defaults>
</compile_context>

<pallas_src>
import jax
import jax.numpy as jnp
import numpy as np
from jax.experimental import pallas as pl
from jax.experimental.pallas import tpu as pltpu


# ----------------------------------------------------------------------------
# Pallas kernel: one graph-batch per grid step, weights resident in VMEM
# ----------------------------------------------------------------------------
def gnn_kernel(a_ref, pool_ref, x_ref,
               w1_ref, w2_ref, wf1_ref, wf2row_ref, bias_ref,
               out_ref):
    f32 = jnp.float32
    bf16 = jnp.bfloat16

    a = a_ref[...]                       # (Nt, Nt) bf16, normalized adjacency
    x = x_ref[...]                       # (Nt, F)  bf16, node features
    p = pool_ref[...]                    # (Gp, Nt) bf16, mean-pool operator

    b1 = bias_ref[0:1, :]                # (1, H) f32
    b2 = bias_ref[1:2, :]
    bf1 = bias_ref[2:3, :]
    bf2 = bias_ref[3:4, 0:1]             # (1, 1) f32

    # --- GCNConv 1: A_hat @ (X W1) + b1, ReLU (dropout = identity in eval) ---
    h = jnp.dot(x, w1_ref[...], preferred_element_type=f32)
    h = jnp.dot(a, h.astype(bf16), preferred_element_type=f32)
    h = jnp.maximum(h + b1, 0.0)

    # --- GCNConv 2 (last conv: no ReLU / dropout after it) ---
    h = jnp.dot(h.astype(bf16), w2_ref[...], preferred_element_type=f32)
    h = jnp.dot(a, h.astype(bf16), preferred_element_type=f32) + b2

    # --- global_mean_pool: P @ h -> (Gp, H) ---
    g = jnp.dot(p, h.astype(bf16), preferred_element_type=f32)

    # --- fc1 + ReLU ---
    g = jnp.dot(g.astype(bf16), wf1_ref[...], preferred_element_type=f32) + bf1
    g = jnp.maximum(g, 0.0)

    # --- fc2 as VPU multiply + lane-sum (avoids an N=1 MXU matmul) ---
    pred = jnp.sum(g * wf2row_ref[...], axis=-1, keepdims=True) + bf2   # (Gp, 1)

    # Lane-dense store: broadcast each per-graph scalar across the 128 lanes.
    out_ref[...] = jnp.broadcast_to(pred, out_ref.shape)


# ----------------------------------------------------------------------------
# Wrapper: one pallas_call over all graph-batches
# ----------------------------------------------------------------------------
def gnn_forward_pallas(a_hat, pool, x, params):
    """a_hat: (B, Nt, Nt), pool: (B, G, Nt), x: (B, Nt, F) -> (B*G,) predictions."""
    B, NT, _ = a_hat.shape
    GT = pool.shape[1]
    F_in = x.shape[-1]
    H = params["w1"].shape[1]
    GP = ((GT + 7) // 8) * 8          # pad graphs to a sublane multiple
    LANES = 128                       # lane-dense output slab width

    if GP != GT:
        pool = jnp.pad(pool, ((0, 0), (0, GP - GT), (0, 0)))

    # MXU operands in bf16 (f32 accumulation in-kernel); the fc2 row and the
    # packed biases stay f32 because they are consumed on the VPU only.
    bf16 = jnp.bfloat16
    a_b = a_hat.astype(bf16)
    p_b = pool.astype(bf16)
    x_b = x.astype(bf16)
    w1 = params["w1"].astype(bf16)
    w2 = params["w2"].astype(bf16)
    wf1 = params["wf1"].astype(bf16)
    wf2_row = params["wf2"].reshape(1, H).astype(jnp.float32)
    bias = jnp.concatenate(
        [params["b1"].reshape(1, H),
         params["b2"].reshape(1, H),
         params["bf1"].reshape(1, H),
         jnp.broadcast_to(params["bf2"].reshape(1, 1), (1, H))],
        axis=0).astype(jnp.float32)                        # (4, H)

    flops = B * (2 * NT * F_in * H        # x @ w1
                 + 2 * NT * NT * H        # a @ h   (conv1)
                 + 2 * NT * H * H         # h @ w2
                 + 2 * NT * NT * H        # a @ h   (conv2)
                 + 2 * GP * NT * H        # pool @ h
                 + 2 * GP * H * H         # g @ wf1
                 + 2 * GP * H)            # fc2 (VPU)
    bytes_accessed = (2 * (a_b.size + p_b.size + x_b.size
                           + w1.size + w2.size + wf1.size)
                      + 4 * (wf2_row.size + bias.size)
                      + 4 * B * GP * LANES)
    cost = pl.CostEstimate(flops=flops, transcendentals=0,
                           bytes_accessed=bytes_accessed)

    # TODO(synk): at real QM9 scale, replace the dense per-batch A_hat with
    # per-graph block-diagonal tiles selected via PrefetchScalarGridSpec
    # (graph offsets as scalar prefetch) to avoid O(N^2) HBM traffic, and cap
    # the per-step node tile to fit v7x's 64 MiB VMEM / v5e's 16 MiB scoped
    # default (or raise vmem_limit_bytes explicitly).
    # TODO(synk): hidden=32 fills only 32/128 lanes; packing 4 independent
    # graph-batches along the lane axis would raise MXU/VPU occupancy ~4x.
    out = pl.pallas_call(
        gnn_kernel,
        out_shape=jax.ShapeDtypeStruct((B, GP, LANES), jnp.float32),
        grid=(B,),
        in_specs=[
            pl.BlockSpec((None, NT, NT), lambda b: (b, 0, 0)),    # A_hat (per batch)
            pl.BlockSpec((None, GP, NT), lambda b: (b, 0, 0)),    # pool  (per batch)
            pl.BlockSpec((None, NT, F_in), lambda b: (b, 0, 0)),  # x     (per batch)
            pl.BlockSpec((F_in, H), lambda b: (0, 0)),            # w1   (resident)
            pl.BlockSpec((H, H), lambda b: (0, 0)),               # w2   (resident)
            pl.BlockSpec((H, H), lambda b: (0, 0)),               # wf1  (resident)
            pl.BlockSpec((1, H), lambda b: (0, 0)),               # wf2 row (resident)
            pl.BlockSpec((4, H), lambda b: (0, 0)),               # packed biases
        ],
        out_specs=pl.BlockSpec((None, GP, LANES), lambda b: (b, 0, 0)),
        compiler_params=pltpu.CompilerParams(
            dimension_semantics=("parallel",)),   # split batches across TCs on v7x
        cost_estimate=cost,
    )(a_b, p_b, x_b, w1, w2, wf1, wf2_row, bias)

    preds = out[:, :GT, 0].reshape(-1)            # (B * graphs_per_batch,)
    return jnp.squeeze(preds)                     # matches torch .squeeze()


# ----------------------------------------------------------------------------
# Plain-JAX glue: dense operators from (edge_index, batch), params, reference
# ----------------------------------------------------------------------------
def build_gcn_adjacency(edge_index, num_nodes):
    """PyG GCNConv normalization: D^-1/2 (A + I) D^-1/2, A[dst, src] = 1."""
    src, dst = edge_index
    a = jnp.zeros((num_nodes, num_nodes), jnp.float32)
    a = a.at[dst, src].add(1.0)
    a = a + jnp.eye(num_nodes, dtype=jnp.float32)          # self loops
    deg = jnp.sum(a, axis=1)
    dinv = jnp.where(deg > 0, 1.0 / jnp.sqrt(deg), 0.0)
    return a * dinv[:, None] * dinv[None, :]


def build_mean_pool(batch, num_graphs, num_nodes):
    """P[g, n] = 1/|graph g| if node n belongs to graph g."""
    onehot = (batch[None, :] == jnp.arange(num_graphs)[:, None]).astype(jnp.float32)
    counts = jnp.maximum(jnp.sum(onehot, axis=1, keepdims=True), 1.0)
    return onehot / counts


def init_params(key, num_node_features, hidden):
    ks = jax.random.split(key, 8)

    def glorot(k, shape):
        fan_in, fan_out = shape
        lim = jnp.sqrt(6.0 / (fan_in + fan_out))
        return jax.random.uniform(k, shape, jnp.float32, -lim, lim)

    return {
        "w1":  glorot(ks[0], (num_node_features, hidden)),
        "b1":  0.01 * jax.random.normal(ks[1], (1, hidden), jnp.float32),
        "w2":  glorot(ks[2], (hidden, hidden)),
        "b2":  0.01 * jax.random.normal(ks[3], (1, hidden), jnp.float32),
        "wf1": glorot(ks[4], (hidden, hidden)),
        "bf1": 0.01 * jax.random.normal(ks[5], (1, hidden), jnp.float32),
        "wf2": glorot(ks[6], (hidden, 1)),
        "bf2": 0.01 * jax.random.normal(ks[7], (1, 1), jnp.float32),
    }


def gnn_reference(a_hat, pool, x, params):
    """Pure-JAX f32 reference of the same forward (per graph-batch, vmapped)."""
    def one(a, p, xb):
        h = xb @ params["w1"]
        h = jnp.maximum(a @ h + params["b1"], 0.0)
        h = h @ params["w2"]
        h = a @ h + params["b2"]
        g = p @ h
        g = jnp.maximum(g @ params["wf1"] + params["bf1"], 0.0)
        return (g @ params["wf2"] + params["bf2"])[:, 0]
    return jax.vmap(one)(a_hat, pool, x).reshape(-1)


# ----------------------------------------------------------------------------
if __name__ == "__main__":
    key = jax.random.PRNGKey(0)
    k_x, k_p = jax.random.split(key)

    F_IN, HID = 8, 32
    NODES_PER_GRAPH = 8
    GRAPHS_PER_BATCH = 8                                  # pool/out tiles: 8 sublanes
    NUM_BATCHES = 2
    NT = NODES_PER_GRAPH * GRAPHS_PER_BATCH               # 64 nodes per grid step
    NUM_GRAPHS = NUM_BATCHES * GRAPHS_PER_BATCH           # 16 total molecules

    # node features, batched: (B, Nt, F)
    x = jax.random.normal(k_x, (NUM_BATCHES, NT, F_IN), jnp.float32)

    # each graph-batch holds GRAPHS_PER_BATCH ring "molecules" of 8 atoms
    def ring_edges(offset, n):
        s = jnp.arange(n) + offset
        d = (jnp.arange(n) + 1) % n + offset
        return jnp.stack([jnp.concatenate([s, d]), jnp.concatenate([d, s])])

    edge_index = jnp.concatenate(
        [ring_edges(g * NODES_PER_GRAPH, NODES_PER_GRAPH)
         for g in range(GRAPHS_PER_BATCH)], axis=1)       # (2, E) local node ids
    batch_vec = jnp.repeat(jnp.arange(GRAPHS_PER_BATCH), NODES_PER_GRAPH)

    a_hat_b = build_gcn_adjacency(edge_index, NT)                  # (Nt, Nt)
    pool_b = build_mean_pool(batch_vec, GRAPHS_PER_BATCH, NT)      # (G,  Nt)
    a_hat = jnp.tile(a_hat_b[None], (NUM_BATCHES, 1, 1))           # (B, Nt, Nt)
    pool = jnp.tile(pool_b[None], (NUM_BATCHES, 1, 1))             # (B, G,  Nt)

    params = init_params(k_p, F_IN, HID)

    out = jax.jit(gnn_forward_pallas)(a_hat, pool, x, params)
    jax.block_until_ready(out)
    assert out.shape == (NUM_GRAPHS,), out.shape

    ref = gnn_reference(a_hat, pool, x, params)
    np.testing.assert_allclose(np.asarray(out), np.asarray(ref),
                               rtol=5e-2, atol=5e-2)      # bf16-operand tolerance
    print("KERNEL_OK")
</pallas_src>

<mosaic_0001>
module attributes {stable_mosaic.version = 11 : i64} {
  func.func @gnn_kernel(%arg0: i32, %arg1: memref<1x64x64xbf16, #tpu.memory_space<vmem>>, %arg2: memref<1x8x64xbf16, #tpu.memory_space<vmem>>, %arg3: memref<1x64x8xbf16, #tpu.memory_space<vmem>>, %arg4: memref<8x32xbf16, #tpu.memory_space<vmem>>, %arg5: memref<32x32xbf16, #tpu.memory_space<vmem>>, %arg6: memref<32x32xbf16, #tpu.memory_space<vmem>>, %arg7: memref<1x32xf32, #tpu.memory_space<vmem>>, %arg8: memref<4x32xf32, #tpu.memory_space<vmem>>, %arg9: memref<1x8x128xf32, #tpu.memory_space<vmem>>) attributes {dimension_semantics = [#tpu.dimension_semantics<parallel>], iteration_bounds = array<i64: 2>, scalar_prefetch = 0 : i64, scratch_operands = 0 : i64, tpu.core_type = #tpu.core_type<tc>, window_params = [{transform_indices = @transform_0, window_bounds = array<i64: 1, 64, 64>}, {transform_indices = @transform_1, window_bounds = array<i64: 1, 8, 64>}, {transform_indices = @transform_2, window_bounds = array<i64: 1, 64, 8>}, {pipeline_mode = #tpu.pipeline_mode<synchronous>, transform_indices = @transform_3, window_bounds = array<i64: 8, 32>}, {pipeline_mode = #tpu.pipeline_mode<synchronous>, transform_indices = @transform_4, window_bounds = array<i64: 32, 32>}, {pipeline_mode = #tpu.pipeline_mode<synchronous>, transform_indices = @transform_5, window_bounds = array<i64: 32, 32>}, {pipeline_mode = #tpu.pipeline_mode<synchronous>, transform_indices = @transform_6, window_bounds = array<i64: 1, 32>}, {pipeline_mode = #tpu.pipeline_mode<synchronous>, transform_indices = @transform_7, window_bounds = array<i64: 4, 32>}, {transform_indices = @transform_8, window_bounds = array<i64: 1, 8, 128>}]} {
    %c0 = arith.constant 0 : index
    %c0_0 = arith.constant 0 : index
    %c0_1 = arith.constant 0 : index
    %0 = vector.load %arg1[%c0, %c0_0, %c0_1] : memref<1x64x64xbf16, #tpu.memory_space<vmem>>, vector<1x64x64xbf16>
    %1 = vector.shape_cast %0 : vector<1x64x64xbf16> to vector<64x64xbf16>
    %c0_2 = arith.constant 0 : index
    %c0_3 = arith.constant 0 : index
    %c0_4 = arith.constant 0 : index
    %2 = vector.load %arg3[%c0_2, %c0_3, %c0_4] : memref<1x64x8xbf16, #tpu.memory_space<vmem>>, vector<1x64x8xbf16>
    %3 = vector.shape_cast %2 : vector<1x64x8xbf16> to vector<64x8xbf16>
    %c0_5 = arith.constant 0 : index
    %c0_6 = arith.constant 0 : index
    %c0_7 = arith.constant 0 : index
    %4 = vector.load %arg2[%c0_5, %c0_6, %c0_7] : memref<1x8x64xbf16, #tpu.memory_space<vmem>>, vector<1x8x64xbf16>
    %5 = vector.shape_cast %4 : vector<1x8x64xbf16> to vector<8x64xbf16>
    %c0_8 = arith.constant 0 : index
    %c0_9 = arith.constant 0 : index
    %6 = vector.load %arg8[%c0_8, %c0_9] : memref<4x32xf32, #tpu.memory_space<vmem>>, vector<1x32xf32>
    %c1 = arith.constant 1 : index
    %c0_10 = arith.constant 0 : index
    %7 = vector.load %arg8[%c1, %c0_10] : memref<4x32xf32, #tpu.memory_space<vmem>>, vector<1x32xf32>
    %c2 = arith.constant 2 : index
    %c0_11 = arith.constant 0 : index
    %8 = vector.load %arg8[%c2, %c0_11] : memref<4x32xf32, #tpu.memory_space<vmem>>, vector<1x32xf32>
    %c3 = arith.constant 3 : index
    %c0_12 = arith.constant 0 : index
    %9 = vector.load %arg8[%c3, %c0_12] : memref<4x32xf32, #tpu.memory_space<vmem>>, vector<1x1xf32>
    %c0_13 = arith.constant 0 : index
    %c0_14 = arith.constant 0 : index
    %10 = vector.load %arg4[%c0_13, %c0_14] : memref<8x32xbf16, #tpu.memory_space<vmem>>, vector<8x32xbf16>
    %cst = arith.constant dense<0.000000e+00> : vector<64x32xf32>
    %11 = tpu.matmul %3, %10, %cst {dimension_numbers = #tpu.dot_dimension_numbers<[1], [0], [0], [1], [0, 0, 1, 1], [], []>} : vector<64x8xbf16>, vector<8x32xbf16>, vector<64x32xf32> -> vector<64x32xf32>
    %12 = arith.truncf %11 : vector<64x32xf32> to vector<64x32xbf16>
    %cst_15 = arith.constant dense<0.000000e+00> : vector<64x32xf32>
    %13 = tpu.matmul %1, %12, %cst_15 {dimension_numbers = #tpu.dot_dimension_numbers<[1], [0], [0], [1], [0, 0, 1, 1], [], []>} : vector<64x64xbf16>, vector<64x32xbf16>, vector<64x32xf32> -> vector<64x32xf32>
    %14 = vector.broadcast %6 : vector<1x32xf32> to vector<64x32xf32>
    %15 = arith.addf %13, %14 : vector<64x32xf32>
    %cst_16 = arith.constant 0.000000e+00 : f32
    %16 = vector.broadcast %cst_16 : f32 to vector<64x32xf32>
    %17 = arith.maximumf %15, %16 : vector<64x32xf32>
    %18 = arith.truncf %17 : vector<64x32xf32> to vector<64x32xbf16>
    %c0_17 = arith.constant 0 : index
    %c0_18 = arith.constant 0 : index
    %19 = vector.load %arg5[%c0_17, %c0_18] : memref<32x32xbf16, #tpu.memory_space<vmem>>, vector<32x32xbf16>
    %cst_19 = arith.constant dense<0.000000e+00> : vector<64x32xf32>
    %20 = tpu.matmul %18, %19, %cst_19 {dimension_numbers = #tpu.dot_dimension_numbers<[1], [0], [0], [1], [0, 0, 1, 1], [], []>} : vector<64x32xbf16>, vector<32x32xbf16>, vector<64x32xf32> -> vector<64x32xf32>
    %21 = arith.truncf %20 : vector<64x32xf32> to vector<64x32xbf16>
    %cst_20 = arith.constant dense<0.000000e+00> : vector<64x32xf32>
    %22 = tpu.matmul %1, %21, %cst_20 {dimension_numbers = #tpu.dot_dimension_numbers<[1], [0], [0], [1], [0, 0, 1, 1], [], []>} : vector<64x64xbf16>, vector<64x32xbf16>, vector<64x32xf32> -> vector<64x32xf32>
    %23 = vector.broadcast %7 : vector<1x32xf32> to vector<64x32xf32>
    %24 = arith.addf %22, %23 : vector<64x32xf32>
    %25 = arith.truncf %24 : vector<64x32xf32> to vector<64x32xbf16>
    %cst_21 = arith.constant dense<0.000000e+00> : vector<8x32xf32>
    %26 = tpu.matmul %5, %25, %cst_21 {dimension_numbers = #tpu.dot_dimension_numbers<[1], [0], [0], [1], [0, 0, 1, 1], [], []>} : vector<8x64xbf16>, vector<64x32xbf16>, vector<8x32xf32> -> vector<8x32xf32>
    %27 = arith.truncf %26 : vector<8x32xf32> to vector<8x32xbf16>
    %c0_22 = arith.constant 0 : index
    %c0_23 = arith.constant 0 : index
    %28 = vector.load %arg6[%c0_22, %c0_23] : memref<32x32xbf16, #tpu.memory_space<vmem>>, vector<32x32xbf16>
    %cst_24 = arith.constant dense<0.000000e+00> : vector<8x32xf32>
    %29 = tpu.matmul %27, %28, %cst_24 {dimension_numbers = #tpu.dot_dimension_numbers<[1], [0], [0], [1], [0, 0, 1, 1], [], []>} : vector<8x32xbf16>, vector<32x32xbf16>, vector<8x32xf32> -> vector<8x32xf32>
    %30 = vector.broadcast %8 : vector<1x32xf32> to vector<8x32xf32>
    %31 = arith.addf %29, %30 : vector<8x32xf32>
    %cst_25 = arith.constant 0.000000e+00 : f32
    %32 = vector.broadcast %cst_25 : f32 to vector<8x32xf32>
    %33 = arith.maximumf %31, %32 : vector<8x32xf32>
    %c0_26 = arith.constant 0 : index
    %c0_27 = arith.constant 0 : index
    %34 = vector.load %arg7[%c0_26, %c0_27] : memref<1x32xf32, #tpu.memory_space<vmem>>, vector<1x32xf32>
    %35 = vector.broadcast %34 : vector<1x32xf32> to vector<8x32xf32>
    %36 = arith.mulf %33, %35 : vector<8x32xf32>
    %cst_28 = arith.constant dense<0.000000e+00> : vector<8xf32>
    %37 = vector.multi_reduction <add>, %36, %cst_28 [1] : vector<8x32xf32> to vector<8xf32>
    %38 = vector.shape_cast %37 : vector<8xf32> to vector<8x1xf32>
    %39 = vector.broadcast %9 : vector<1x1xf32> to vector<8x1xf32>
    %40 = arith.addf %38, %39 : vector<8x1xf32>
    %41 = vector.shape_cast %40 : vector<8x1xf32> to vector<8x1xf32>
    %42 = vector.broadcast %41 : vector<8x1xf32> to vector<8x128xf32>
    %c0_29 = arith.constant 0 : index
    %c0_30 = arith.constant 0 : index
    %c0_31 = arith.constant 0 : index
    %43 = vector.load %arg9[%c0_29, %c0_30, %c0_31] : memref<1x8x128xf32, #tpu.memory_space<vmem>>, vector<1x8x128xf32>
    %44 = vector.shape_cast %43 : vector<1x8x128xf32> to vector<8x128xf32>
    %45 = vector.shape_cast %42 : vector<8x128xf32> to vector<1x8x128xf32>
    tpu.vector_store %arg9[%c0_29, %c0_30, %c0_31], %45 {strides = array<i32>} : memref<1x8x128xf32, #tpu.memory_space<vmem>>, vector<1x8x128xf32>,
    return
  }
  func.func @transform_0(%arg0: i32) -> (i32, i32, i32) {
    %c0_i32 = arith.constant 0 : i32
    %c0_i32_0 = arith.constant 0 : i32
    %c0_i32_1 = arith.constant 0 : i32
    return %arg0, %c0_i32, %c0_i32_0 : i32, i32, i32
  }
  func.func @transform_1(%arg0: i32) -> (i32, i32, i32) {
    %c0_i32 = arith.constant 0 : i32
    %c0_i32_0 = arith.constant 0 : i32
    %c0_i32_1 = arith.constant 0 : i32
    return %arg0, %c0_i32, %c0_i32_0 : i32, i32, i32
  }
  func.func @transform_2(%arg0: i32) -> (i32, i32, i32) {
    %c0_i32 = arith.constant 0 : i32
    %c0_i32_0 = arith.constant 0 : i32
    %c0_i32_1 = arith.constant 0 : i32
    return %arg0, %c0_i32, %c0_i32_0 : i32, i32, i32
  }
  func.func @transform_3(%arg0: i32) -> (i32, i32) {
    %c0_i32 = arith.constant 0 : i32
    %c0_i32_0 = arith.constant 0 : i32
    %c0_i32_1 = arith.constant 0 : i32
    return %c0_i32, %c0_i32_0 : i32, i32
  }
  func.func @transform_4(%arg0: i32) -> (i32, i32) {
    %c0_i32 = arith.constant 0 : i32
    %c0_i32_0 = arith.constant 0 : i32
    %c0_i32_1 = arith.constant 0 : i32
    return %c0_i32, %c0_i32_0 : i32, i32
  }
  func.func @transform_5(%arg0: i32) -> (i32, i32) {
    %c0_i32 = arith.constant 0 : i32
    %c0_i32_0 = arith.constant 0 : i32
    %c0_i32_1 = arith.constant 0 : i32
    return %c0_i32, %c0_i32_0 : i32, i32
  }
  func.func @transform_6(%arg0: i32) -> (i32, i32) {
    %c0_i32 = arith.constant 0 : i32
    %c0_i32_0 = arith.constant 0 : i32
    %c0_i32_1 = arith.constant 0 : i32
    return %c0_i32, %c0_i32_0 : i32, i32
  }
  func.func @transform_7(%arg0: i32) -> (i32, i32) {
    %c0_i32 = arith.constant 0 : i32
    %c0_i32_0 = arith.constant 0 : i32
    %c0_i32_1 = arith.constant 0 : i32
    return %c0_i32, %c0_i32_0 : i32, i32
  }
  func.func @transform_8(%arg0: i32) -> (i32, i32, i32) {
    %c0_i32 = arith.constant 0 : i32
    %c0_i32_0 = arith.constant 0 : i32
    %c0_i32_1 = arith.constant 0 : i32
    return %arg0, %c0_i32, %c0_i32_0 : i32, i32, i32
  }
}

</mosaic_0001>

<bundles_post_ra>
// kernel: squeeze.1
= control target key start
LH: loop header
LB: loop body
LE: loop exit
PB: predicated region body
PF: predicated region fallthrough
CT: control target
= control target key end

     0   :  { %s80_s0 = inlined_call_operand.vmem [shape: f32[2,8], index: 0, kind: input, shape index: {}]   ;;  %s81_s1 = inlined_call_operand.hbm [shape: f32[16], index: 1, kind: output, shape index: {}]  }
   0x1   :  { %v5_v0 = vld [vmem:[%s80_s0] sm:$0x3] }
   0x2   :  { %2 = vsyncpa [#allocation1], 0  ;;  %6 = vst [vmem:[#allocation3] sm:$0x3] %v5_v0  ;;  %vm8_vm0 = vcmask 64512   ;;  %s62_s0 = smov 8  }
   0x3   :  { %vm14_vm1 = vcmask 130112   ;;  %s63_s8 = smov [#allocation0]   ;;  %s27_s1 = sshll.u32 %s81_s1, 4  ;;  %s28_s1 = int_to_ptr.hbm [resolvable:$true] %s27_s1 }
   0x4   :  { %s25_s9 = sshll.u32 %s63_s8, 4  ;;  %s26_s9 = int_to_ptr.vmem [resolvable:$true] %s25_s9 }
   0x9   :  { %v11_v1 = vld [vmem:[#allocation3 + $0x1] sm:$0x1]   ;;  %v7_v2 = vld [vmem:[#allocation3] sm:$0x1]  }
   0xa   :  { %12 = vrot.lane.b32.xlu0 %v11_v1, %s62_s0  ;;  %9 = vst.msk [vmem:[#allocation2] sm:$0x1] %vm8_vm0, %v7_v2  }
  0x7c   :  { %v13_v3 = vpop.permute.xlu0 %12  }
  0x7d   :  { %15 = vst.msk [vmem:[#allocation2] sm:$0x1] %vm14_vm1, %v13_v3  }
  0x84   :  { %v18_v4 = vld [vmem:[#allocation2] sm:$0x1] }
  0x85   :  { %21 = vst [vmem:[#allocation0] sm:$0x1] %v18_v4 }
  0x86   :  { %30 = dma.vmem_to_hbm [thread:$0]  %s26_s9, 16, %s28_s1, [#allocation1]  }
  0x87   :  { %60 = dma.done.wait [#allocation1], 16  }
  0x88   :  { %61 = vsyncadd [#allocation1], 4294967280 }
  0x89   :  { %33 = vsyncpa [#allocation1], 1 }

// kernel: gnn_forward_pallas.1
= control target key start
LH: loop header
LB: loop body
LE: loop exit
PB: predicated region body
PF: predicated region fallthrough
CT: control target
= control target key end

     0   :  { %s911_s27 = smov 0   ;;  %s988_s0 = inlined_call_operand.vmem [shape: bf16[2,64,64], index: 0, kind: input, shape index: {}]   ;;  %s989_s1 = inlined_call_operand.vmem [shape: bf16[2,8,64], index: 1, kind: input, shape index: {}]   ;;  %s990_s2 = inlined_call_operand.vmem [shape: bf16[2,64,8], index: 2, kind: input, shape index: {}]   ;;  %s991_s3 = inlined_call_operand.vmem [shape: bf16[8,32], index: 3, kind: input, shape index: {}]   ;;  %s992_s4 = inlined_call_operand.vmem [shape: bf16[32,32], index: 4, kind: input, shape index: {}]   ;;  %s993_s5 = inlined_call_operand.vmem [shape: bf16[32,32], index: 5, kind: input, shape index: {}]   ;;  %s994_s6 = inlined_call_operand.vmem [shape: f32[1,32], index: 6, kind: input, shape index: {}]   ;;  %s995_s7 = inlined_call_operand.vmem [shape: f32[4,32], index: 7, kind: input, shape index: {}]   ;;  %s996_s8 = inlined_call_operand.vmem [shape: f32[2,8,128], index: 8, kind: output, shape index: {}]  }
   0x1 LB: > { %s749_s28 = sadd.s32 4294967295, %s863_s27   ;;  %p753_p0 = scmp.ge.s32.totalorder %s863_s27, 1  ;;  %s863_s27 = sphi %s911_s27, %s18_s27  }
   0x2   : > { %p281_p1 = scmp.lt.s32.totalorder %s863_s27, 3 }
   0x4   : > { %p282_p2 = pnand %p753_p0, %p281_p1 }
   0x5   : > { %p323_p3 = scmp.lt.s32.totalorder (!%p282_p2), %s749_s28, 1 }
   0x6   : > { %285 = sbr.rel (%p282_p2) target bundleno = 1268 (0x4f4), region = 52 }
   0xb   : > { %v363_v0 = vld [vmem:[%s991_s3] sm:$0xf]  ;;  %vm397_vm0 = vcmask 1043456   ;;  %s998_s28 = smov (!%p323_p3, %s749_s28), 1  ;;  %vm384_vm1 = vcmask 64512   ;;  %vm455_vm2 = vcmask 523264  }
   0xc   : > { %v399_v1 = vsel %vm397_vm0, %v363_v0, 0  ;;  %s828_s9 = sshll.u32 %s998_s28, 5  ;;  %v839_v22 = vld [vmem:[%s992_s4 + $0x8] sm:$0xff]  ;;  %v838_v23 = vld [vmem:[%s992_s4] sm:$0xff]  ;;  %vm525_vm3 = vcmask 261120   ;;  %s756_s30 = sshll.u32 %s998_s28, 2 }
   0xd   : > { %408 = vmatpush.bf16.msra.mxu0 %v399_v1  ;;  %s336_s12 = scalar_lea.vmem %s990_s2, %s828_s9  ;;  %s327_s15 = scalar_lea.vmem %s988_s0, %s828_s9  ;;  %544 = vmatpush.bf16.msra.mxu2 %v839_v22  ;;  %v852_v25 = vld [vmem:[%s995_s7] ss:$0 sm:$0xff] }
   0xe   : > { %v834_v2 = vld [vmem:[%s336_s12] sm:$0xff]  ;;  %v835_v3 = vld [vmem:[%s336_s12 + $0x8] sm:$0xff]  ;;  %v836_v4 = vld [vmem:[%s336_s12 + $0x10] sm:$0xff]  ;;  %s331_s11 = scalar_lea.vmem %s989_s1, %s756_s30  ;;  %s759_s18 = sshll.u32 %s998_s28, 3 }
   0xf   : > { %v837_v5 = vld [vmem:[%s336_s12 + $0x18] sm:$0xff]  ;;  %v931_v18 = vld [vmem:[%s327_s15] sm:$0xff]  ;;  %v831_v19 = vld [vmem:[%s327_s15 + $0x8] sm:$0xff]  ;;  %s340_s21 = scalar_lea.vmem %s996_s8, %s759_s18 }
  0x10   : > { %776 = vmatmul.msk.bf16.vlgmr.msra.gmra.mxu0 %vm384_vm1, %v834_v2  ;;  %v832_v20 = vld [vmem:[%s327_s15 + $0x10] sm:$0xff]  ;;  %v833_v21 = vld [vmem:[%s327_s15 + $0x18] sm:$0xff] }
  0x11   : > { %545 = vmatpush.bf16.msra.mxu2 %v838_v23 }
  0x20   : > { %777 = vmatmul.msk.bf16.gmra.mxu0 %vm384_vm1, %v835_v3 }
  0x30   : > { %778 = vmatmul.msk.bf16.gmra.mxu0 %vm384_vm1, %v836_v4 }
  0x40   : > { %779 = vmatmul.msk.bf16.gmra.mxu0 %vm384_vm1, %v837_v5 }
  0x8d   : > { %v410_v6 = vpop.f32.mrf.mxu0 }
  0x95   : > { %v412_v7 = vpop.f32.mrf.mxu0 }
  0x96   : > { %v430_v17 = vpack.c.bf16 %v412_v7, %v410_v6  ;;  %v841_v7 = vld [vmem:[%s993_s5 + $0x8] sm:$0xff] }
  0x97   : > { %648 = vmatpush.bf16.msrb.mxu2 %v841_v7 }
  0x9d   : > { %v415_v8 = vpop.f32.mrf.mxu0 }
  0xa5   : > { %v417_v9 = vpop.f32.mrf.mxu0 }
  0xa6   : > { %v431_v16 = vpack.c.bf16 %v417_v9, %v415_v8  ;;  %v840_v8 = vld [vmem:[%s993_s5] sm:$0xff] }
  0xa7   : > { %649 = vmatpush.bf16.msrb.mxu2 %v840_v8 }
  0xad   : > { %v420_v10 = vpop.f32.mrf.mxu0 }
  0xb5   : > { %v422_v11 = vpop.f32.mrf.mxu0 }
  0xb6   : > { %v432_v15 = vpack.c.bf16 %v422_v11, %v420_v10  ;;  %v853_v10 = vld [vmem:[%s995_s7 + $0x1] ss:$0 sm:$0xff] }
  0xbd   : > { %v425_v12 = vpop.f32.mrf.mxu0 }
  0xc5   : > { %v427_v13 = vpop.f32.mrf.mxu0 }
  0xc6   : > { %v433_v14 = vpack.c.bf16 %v427_v13, %v425_v12 }
  0xc8   : > { %472 = vmatpush.bf16.msra.mxu1 %v433_v14 }
  0xcc   : > { %473 = vmatpush.bf16.msra.mxu1 %v432_v15 }
  0xd0   : > { %474 = vmatpush.bf16.msra.mxu1 %v431_v16 }
  0xd4   : > { %475 = vmatpush.bf16.msra.mxu1 %v430_v17 }
  0xd7   : > { %796 = vmatmul.msk.bf16.vlgmr.msra.gmra.mxu1 %vm455_vm2, %v931_v18 }
  0xe7   : > { %797 = vmatmul.msk.bf16.gmra.mxu1 %vm455_vm2, %v831_v19 }
  0xf7   : > { %798 = vmatmul.msk.bf16.gmra.mxu1 %vm455_vm2, %v832_v20 }
 0x107   : > { %799 = vmatmul.msk.bf16.gmra.mxu1 %vm455_vm2, %v833_v21 }
 0x154   : > { %v477_v24 = vpop.f32.mrf.mxu1 }
 0x155   : > { %v478_v26 = vadd.f32 %v852_v25, %v477_v24  ;;  %v358_v24 = vld [vmem:[%s331_s11] sm:$0xf] }
 0x157   : > { %v497_v29 = vmax.f32 %v478_v26, 0.0 }
 0x15c   : > { %v479_v27 = vpop.f32.mrf.mxu1 }
 0x15d   : > { %v480_v28 = vadd.f32 %v852_v25, %v479_v27 }
 0x15f   : > { %v498_v30 = vmax.f32 %v480_v28, 0.0  ;;  %v854_v28 = vld [vmem:[%s995_s7 + $0x2] ss:$0 sm:$0xff] }
 0x161   : > { %v505_v31 = vpack.c.bf16 %v498_v30, %v497_v29 }
 0x163   : > { %808 = vmatmul.msk.bf16.vlgmr.msra.gmra.mxu2 %vm525_vm3, %v505_v31  ;;  %v855_v31 = vld [vmem:[%s994_s6] ss:$0 sm:$0xff] }
 0x164   : > { %v482_v32 = vpop.f32.mrf.mxu1 }
 0x165   : > { %v483_v33 = vadd.f32 %v852_v25, %v482_v32 }
 0x167   : > { %v499_v36 = vmax.f32 %v483_v33, 0.0 }
 0x16c   : > { %v484_v34 = vpop.f32.mrf.mxu1 }
 0x16d   : > { %v485_v35 = vadd.f32 %v852_v25, %v484_v34 }
 0x16f   : > { %v500_v37 = vmax.f32 %v485_v35, 0.0 }
 0x171   : > { %v506_v38 = vpack.c.bf16 %v500_v37, %v499_v36  ;;  %v865_v36 = vmov 0   ;;  %v856_v37 = vld [vmem:[%s995_s7 + $0x3] ss:$0 sm:$0xff] }
 0x172   : > { %851 = vset.pattern.permute.xlu0 %v865_v36 }
 0x173   : > { %809 = vmatmul.msk.bf16.gmra.mxu2 %vm525_vm3, %v506_v38 }
 0x174   : > { %v487_v39 = vpop.f32.mrf.mxu1 }
 0x175   : > { %v488_v40 = vadd.f32 %v852_v25, %v487_v39 }
 0x177   : > { %v501_v43 = vmax.f32 %v488_v40, 0.0 }
 0x17c   : > { %v489_v41 = vpop.f32.mrf.mxu1 }
 0x17d   : > { %v490_v42 = vadd.f32 %v852_v25, %v489_v41 }
 0x17f   : > { %v502_v44 = vmax.f32 %v490_v42, 0.0 }
 0x181   : > { %v507_v45 = vpack.c.bf16 %v502_v44, %v501_v43 }
 0x183   : > { %810 = vmatmul.msk.bf16.gmra.mxu2 %vm525_vm3, %v507_v45 }
 0x184   : > { %v492_v46 = vpop.f32.mrf.mxu1 }
 0x185   : > { %v493_v47 = vadd.f32 %v852_v25, %v492_v46 }
 0x187   : > { %v503_v50 = vmax.f32 %v493_v47, 0.0 }
 0x18c   : > { %v494_v48 = vpop.f32.mrf.mxu1 }
 0x18d   : > { %v495_v49 = vadd.f32 %v852_v25, %v494_v48 }
 0x18f   : > { %v504_v51 = vmax.f32 %v495_v49, 0.0 }
 0x191   : > { %v508_v52 = vpack.c.bf16 %v504_v51, %v503_v50 }
 0x193   : > { %811 = vmatmul.msk.bf16.gmra.mxu2 %vm525_vm3, %v508_v52 }
 0x1e6   : > { %v547_v53 = vpop.f32.mrf.mxu2 }
 0x1ee   : > { %v549_v54 = vpop.f32.mrf.mxu2 }
 0x1ef   : > { %v567_v0 = vpack.c.bf16 %v549_v54, %v547_v53 }
 0x1f6   : > { %v552_v55 = vpop.f32.mrf.mxu2 }
 0x1fe   : > { %v554_v56 = vpop.f32.mrf.mxu2 }
 0x1ff   : > { %v568_v63 = vpack.c.bf16 %v554_v56, %v552_v55 }
 0x206   : > { %v557_v57 = vpop.f32.mrf.mxu2 }
 0x20e   : > { %v559_v58 = vpop.f32.mrf.mxu2 }
 0x20f   : > { %v569_v62 = vpack.c.bf16 %v559_v58, %v557_v57 }
 0x216   : > { %v562_v59 = vpop.f32.mrf.mxu2 }
 0x21e   : > { %v564_v60 = vpop.f32.mrf.mxu2 }
 0x21f   : > { %v570_v61 = vpack.c.bf16 %v564_v60, %v562_v59 }
 0x221   : > { %576 = vmatpush.bf16.msra.mxu3 %v570_v61 }
 0x225   : > { %577 = vmatpush.bf16.msra.mxu3 %v569_v62 }
 0x229   : > { %578 = vmatpush.bf16.msra.mxu3 %v568_v63 }
 0x22d   : > { %579 = vmatpush.bf16.msra.mxu3 %v567_v0 }
 0x230   : > { %812 = vmatmul.msk.bf16.vlgmr.msra.gmra.mxu3 %vm455_vm2, %v931_v18 }
 0x240   : > { %813 = vmatmul.msk.bf16.gmra.mxu3 %vm455_vm2, %v831_v19 }
 0x250   : > { %814 = vmatmul.msk.bf16.gmra.mxu3 %vm455_vm2, %v832_v20 }
 0x260   : > { %815 = vmatmul.msk.bf16.gmra.mxu3 %vm455_vm2, %v833_v21 }
 0x2b3   : > { %v581_v1 = vpop.f32.mrf.mxu3 }
 0x2b4   : > { %v582_v22 = vadd.f32 %v853_v10, %v581_v1 }
 0x2bb   : > { %v583_v2 = vpop.f32.mrf.mxu3 }
 0x2bc   : > { %v584_v20 = vadd.f32 %v853_v10, %v583_v2 }
 0x2be   : > { %v601_v23 = vpack.c.bf16 %v584_v20, %v582_v22 }
 0x2c3   : > { %v586_v3 = vpop.f32.mrf.mxu3 }
 0x2c4   : > { %v587_v19 = vadd.f32 %v853_v10, %v586_v3 }
 0x2cb   : > { %v588_v4 = vpop.f32.mrf.mxu3 }
 0x2cc   : > { %v589_v17 = vadd.f32 %v853_v10, %v588_v4 }
 0x2ce   : > { %v602_v21 = vpack.c.bf16 %v589_v17, %v587_v19 }
 0x2d3   : > { %v591_v5 = vpop.f32.mrf.mxu3 }
 0x2d4   : > { %v592_v16 = vadd.f32 %v853_v10, %v591_v5 }
 0x2db   : > { %v593_v6 = vpop.f32.mrf.mxu3 }
 0x2dc   : > { %v594_v14 = vadd.f32 %v853_v10, %v593_v6 }
 0x2de   : > { %v603_v18 = vpack.c.bf16 %v594_v14, %v592_v16 }
 0x2e3   : > { %v596_v9 = vpop.f32.mrf.mxu3 }
 0x2e4   : > { %v597_v12 = vadd.f32 %v853_v10, %v596_v9 }
 0x2eb   : > { %v598_v11 = vpop.f32.mrf.mxu3 }
 0x2ec   : > { %v599_v13 = vadd.f32 %v853_v10, %v598_v11 }
 0x2ee   : > { %v604_v15 = vpack.c.bf16 %v599_v13, %v597_v12 }
 0x2f0   : > { %612 = vmatpush.bf16.msrb.mxu0 %v604_v15 }
 0x2f4   : > { %613 = vmatpush.bf16.msrb.mxu0 %v603_v18 }
 0x2f8   : > { %614 = vmatpush.bf16.msrb.mxu0 %v602_v21 }
 0x2fc   : > { %615 = vmatpush.bf16.msrb.mxu0 %v601_v23 }
 0x2ff   : > { %816 = vmatmul.msk.bf16.vlgmr.msrb.gmra.mxu0 %vm455_vm2, %v358_v24 }
 0x37c   : > { %v617_v25 = vpop.f32.mrf.mxu0 }
 0x37d   : > { %v621_v26 = vpack.c.bf16 %v617_v25, %v617_v25 }
 0x37f   : > { %825 = vmatmul.msk.bf16.vlgmr.msrb.gmra.mxu2 %vm525_vm3, %v621_v26 }
 0x384   : > { %v619_v27 = vpop.f32.mrf.mxu0 }
 0x402   : > { %v651_v29 = vpop.f32.mrf.mxu2 }
 0x403   : > { %v652_v30 = vadd.f32 %v854_v28, %v651_v29 }
 0x405   : > { %v655_v32 = vmax.f32 %v652_v30, 0.0 }
 0x407   : > { %v660_v33 = vmul.f32 %v855_v31, %v655_v32 }
 0x409   : > { %v661_v34 = vsel %vm525_vm3, %v660_v33, 0.0 }
 0x40a   : > { %v653_v35 = vpop.f32.mrf.mxu2  ;;  %662 = vadd.xlane.f32.xlu0 %v661_v34 }
 0x47d   : > { %v663_v38 = vpop.xlane.xlu0 %662 }
 0x47e   : > { %v665_v39 = vadd.f32 %v856_v37, %v663_v38 }
 0x480   : > { %668 = vperm.xlu0 %851, %v665_v39  }
 0x4f2   : > { %v669_v40 = vpop.permute.xlu0 %668 }
 0x4f3   : > { %671 = vst [vmem:[%s340_s21] sm:$0xff] %v669_v40 }
 0x4f4 PF: > { %s18_s27 = sadd.s32 1, %s863_s27  }
 0x4f5   : > { %p15_p4 = scmp.ge.s32.totalorder %s18_s27, 4  }
 0x4f7   :  { %17 = sbr.rel (!%p15_p4) target bundleno = 1 (0x1), region = 88 }

</bundles_post_ra>
